<compile_context>
chip_gen: v5e
topology: v5e:2x2
jax: 0.10.0
libtpu: 0.0.40
codegen_flags: <defaults>
</compile_context>

<pallas_src>
import functools

import jax
import jax.numpy as jnp
import numpy as np
from jax.experimental import pallas as pl
from jax.experimental.pallas import tpu as pltpu


def _round_up(x, m):
    return (x + m - 1) // m * m


def _int_pow(q, k):
    """q**k for static int k >= 1 via a multiply chain (no EUP pow)."""
    result = None
    base = q
    while k > 0:
        if k & 1:
            result = base if result is None else result * base
        k >>= 1
        if k:
            base = base * base
    return result


def _focal_loss_kernel(logits_ref, target_ref, weight_ref, loss_ref, wsum_ref, *, gamma):
    x = logits_ref[...].astype(jnp.float32)   # (TILE_N, C_pad)
    t = target_ref[...]                        # (TILE_N, 1) int32, -1 for padded rows
    w = weight_ref[...]                        # (1, C_pad) f32, 0 for padded classes
    tn, cp = x.shape

    # --- first softmax / log_softmax over classes (last axis = lanes) ---
    m = jnp.max(x, axis=1, keepdims=True)
    sh = x - m
    e = jnp.exp(sh)                                     # padded lanes -> 0
    sum_e = jnp.sum(e, axis=1, keepdims=True)
    lse = jnp.log(sum_e)
    logp = sh - lse                                     # log_softmax(input)

    # --- focal modulation: z = (1 - p)^gamma * logp ---
    if gamma == 0.0:
        z = logp                                        # module default: plain CE
    else:
        p = e * (1.0 / sum_e)                           # softmax, reuses e (no extra exp)
        one_minus_p = 1.0 - p
        if float(gamma) == float(int(gamma)):
            z = _int_pow(one_minus_p, int(gamma)) * logp
        else:
            # non-integer gamma: exp(g*log1p(-p)); p==1 -> exp(-inf)=0, 0*logp(~0)=0
            z = jnp.exp(gamma * jnp.log1p(-p)) * logp

    # --- cross_entropy(z, target): second log_softmax + weighted NLL gather ---
    m2 = jnp.max(z, axis=1, keepdims=True)
    sh2 = z - m2
    lse2 = jnp.log(jnp.sum(jnp.exp(sh2), axis=1, keepdims=True))   # (TILE_N, 1)

    col = jax.lax.broadcasted_iota(jnp.int32, (tn, cp), 1)
    onehot = (col == t).astype(jnp.float32)             # all-zero for padded rows
    sel_w = jnp.sum(onehot * w, axis=1, keepdims=True)  # weight[target]  (TILE_N, 1)
    sel_sh2 = jnp.sum(onehot * sh2, axis=1, keepdims=True)
    # -log_softmax(z)[target] = lse2 - sh2[target]
    loss_sum = jnp.sum(sel_w * (lse2 - sel_sh2))
    w_sum = jnp.sum(sel_w)

    loss_ref[...] = jnp.full(loss_ref.shape, loss_sum, jnp.float32)
    wsum_ref[...] = jnp.full(wsum_ref.shape, w_sum, jnp.float32)


def focal_loss_pallas(logits, target, weight=None, gamma=0.0, *, tile_n=None):
    """logits (N, C) f32/bf16, target (N,) int, weight (C,) or None -> scalar f32."""
    n, c = logits.shape
    if weight is None:
        weight = jnp.ones((c,), jnp.float32)

    c_pad = _round_up(max(c, 128), 128)
    itemsize = jnp.dtype(logits.dtype).itemsize

    if tile_n is None:
        # Keep one input tile around 4 MiB so the double-buffered pipeline fits
        # comfortably even in v7x's 64 MiB VMEM, while amortizing the ~0.35 us
        # per-grid-step overhead.
        budget = 4 * 1024 * 1024
        tile_n = max(8, min(2048, (budget // (c_pad * itemsize)) // 8 * 8))
    tile_n = int(min(tile_n, _round_up(n, 8)))
    n_pad = _round_up(n, tile_n)
    num_tiles = n_pad // tile_n

    # Pad classes to C_pad with a huge negative (falls out of both softmaxes) and
    # rows to N_pad; padded rows get target = -1 so they contribute exactly 0.
    logits_p = jnp.pad(logits, ((0, n_pad - n), (0, c_pad - c)),
                       constant_values=-1e30)
    target_p = jnp.pad(target.astype(jnp.int32), (0, n_pad - n),
                       constant_values=-1).reshape(n_pad, 1)
    weight_p = jnp.pad(weight.astype(jnp.float32), (0, c_pad - c)).reshape(1, c_pad)

    out_shape = (jax.ShapeDtypeStruct((num_tiles, 8, 128), jnp.float32),
                 jax.ShapeDtypeStruct((num_tiles, 8, 128), jnp.float32))

    loss_parts, w_parts = pl.pallas_call(
        functools.partial(_focal_loss_kernel, gamma=float(gamma)),
        out_shape=out_shape,
        grid=(num_tiles,),
        in_specs=[
            pl.BlockSpec((tile_n, c_pad), lambda i: (i, 0)),
            pl.BlockSpec((tile_n, 1), lambda i: (i, 0)),
            pl.BlockSpec((1, c_pad), lambda i: (0, 0)),
        ],
        out_specs=(
            pl.BlockSpec((1, 8, 128), lambda i: (i, 0, 0)),
            pl.BlockSpec((1, 8, 128), lambda i: (i, 0, 0)),
        ),
        compiler_params=pltpu.CompilerParams(
            dimension_semantics=("parallel",),
            vmem_limit_bytes=32 * 1024 * 1024,
        ),
    )(logits_p, target_p, weight_p)

    # Weighted 'mean' reduction done ONCE over all tiles: sum(loss)/sum(weight[target]).
    return jnp.sum(loss_parts[:, 0, 0]) / jnp.sum(w_parts[:, 0, 0])


def focal_loss_ref(logits, target, weight, gamma):
    """Pure-JAX reference matching the PyTorch module."""
    logits = logits.astype(jnp.float32)
    logp = jax.nn.log_softmax(logits, axis=1)
    if gamma == 0.0:
        z = logp
    else:
        p = jnp.exp(logp)
        z = (1.0 - p) ** gamma * logp
    logq = jax.nn.log_softmax(z, axis=1)
    sel_logq = jnp.take_along_axis(logq, target[:, None], axis=1)[:, 0]
    sel_w = weight[target]
    return jnp.sum(-sel_w * sel_logq) / jnp.sum(sel_w)


if __name__ == "__main__":
    N, C = 8, 16          # small demo shapes consistent with the module's forward
    key = jax.random.PRNGKey(0)
    k_logits, k_target = jax.random.split(key)
    logits = jax.random.normal(k_logits, (N, C), dtype=jnp.float32)
    target = jax.random.randint(k_target, (N,), 0, C, dtype=jnp.int32)
    weight = jnp.linspace(0.5, 1.5, C, dtype=jnp.float32)

    # gamma = 2 (integer multiply-chain path) with per-class weights, f32 ingest
    loss = jax.block_until_ready(focal_loss_pallas(logits, target, weight, gamma=2.0))
    ref = focal_loss_ref(logits, target, weight, 2.0)
    np.testing.assert_allclose(np.asarray(loss), np.asarray(ref), rtol=1e-5, atol=1e-5)

    # gamma = 0 (module default; focal factor skipped -> plain weighted CE of logp)
    loss0 = jax.block_until_ready(focal_loss_pallas(logits, target, weight, gamma=0.0))
    ref0 = focal_loss_ref(logits, target, weight, 0.0)
    np.testing.assert_allclose(np.asarray(loss0), np.asarray(ref0), rtol=1e-5, atol=1e-5)

    # bf16 ingest path (cast to f32 inside the kernel); compare against the same
    # bf16-rounded logits run through the f32 reference.
    logits_bf16 = logits.astype(jnp.bfloat16)
    loss_bf = jax.block_until_ready(
        focal_loss_pallas(logits_bf16, target, weight, gamma=2.0))
    ref_bf = focal_loss_ref(logits_bf16.astype(jnp.float32), target, weight, 2.0)
    np.testing.assert_allclose(np.asarray(loss_bf), np.asarray(ref_bf),
                               rtol=1e-4, atol=1e-4)

    print("KERNEL_OK")
</pallas_src>

<mosaic_0001>
module attributes {stable_mosaic.version = 11 : i64} {
  func.func @_focal_loss_kernel(%arg0: i32, %arg1: memref<8x128xf32, #tpu.memory_space<vmem>>, %arg2: memref<8x1xi32, #tpu.memory_space<vmem>>, %arg3: memref<1x128xf32, #tpu.memory_space<vmem>>, %arg4: memref<1x8x128xf32, #tpu.memory_space<vmem>>, %arg5: memref<1x8x128xf32, #tpu.memory_space<vmem>>) attributes {dimension_semantics = [#tpu.dimension_semantics<parallel>], iteration_bounds = array<i64: 1>, scalar_prefetch = 0 : i64, scratch_operands = 0 : i64, tpu.core_type = #tpu.core_type<tc>, window_params = [{transform_indices = @transform_0, window_bounds = array<i64: 8, 128>}, {transform_indices = @transform_1, window_bounds = array<i64: 8, 1>}, {pipeline_mode = #tpu.pipeline_mode<synchronous>, transform_indices = @transform_2, window_bounds = array<i64: 1, 128>}, {transform_indices = @transform_3, window_bounds = array<i64: 1, 8, 128>}, {transform_indices = @transform_4, window_bounds = array<i64: 1, 8, 128>}]} {
    %c0 = arith.constant 0 : index
    %c0_0 = arith.constant 0 : index
    %0 = vector.load %arg1[%c0, %c0_0] : memref<8x128xf32, #tpu.memory_space<vmem>>, vector<8x128xf32>
    %c0_1 = arith.constant 0 : index
    %c0_2 = arith.constant 0 : index
    %1 = vector.load %arg2[%c0_1, %c0_2] : memref<8x1xi32, #tpu.memory_space<vmem>>, vector<8x1xi32>
    %c0_3 = arith.constant 0 : index
    %c0_4 = arith.constant 0 : index
    %2 = vector.load %arg3[%c0_3, %c0_4] : memref<1x128xf32, #tpu.memory_space<vmem>>, vector<1x128xf32>
    %cst = arith.constant dense<0xFF800000> : vector<8xf32>
    %3 = vector.multi_reduction <maximumf>, %0, %cst [1] : vector<8x128xf32> to vector<8xf32>
    %4 = vector.shape_cast %3 : vector<8xf32> to vector<8x1xf32>
    %5 = vector.broadcast %4 : vector<8x1xf32> to vector<8x128xf32>
    %6 = arith.subf %0, %5 : vector<8x128xf32>
    %7 = math.exp %6 : vector<8x128xf32>
    %cst_5 = arith.constant dense<0.000000e+00> : vector<8xf32>
    %8 = vector.multi_reduction <add>, %7, %cst_5 [1] : vector<8x128xf32> to vector<8xf32>
    %9 = vector.shape_cast %8 : vector<8xf32> to vector<8x1xf32>
    %10 = math.log %9 : vector<8x1xf32>
    %11 = vector.broadcast %10 : vector<8x1xf32> to vector<8x128xf32>
    %12 = arith.subf %6, %11 : vector<8x128xf32>
    %cst_6 = arith.constant 1.000000e+00 : f32
    %13 = vector.broadcast %cst_6 : f32 to vector<8x1xf32>
    %14 = arith.divf %13, %9 : vector<8x1xf32>
    %15 = vector.broadcast %14 : vector<8x1xf32> to vector<8x128xf32>
    %16 = arith.mulf %7, %15 : vector<8x128xf32>
    %cst_7 = arith.constant 1.000000e+00 : f32
    %17 = vector.broadcast %cst_7 : f32 to vector<8x128xf32>
    %18 = arith.subf %17, %16 : vector<8x128xf32>
    %19 = arith.mulf %18, %18 : vector<8x128xf32>
    %20 = arith.mulf %19, %12 : vector<8x128xf32>
    %cst_8 = arith.constant dense<0xFF800000> : vector<8xf32>
    %21 = vector.multi_reduction <maximumf>, %20, %cst_8 [1] : vector<8x128xf32> to vector<8xf32>
    %22 = vector.shape_cast %21 : vector<8xf32> to vector<8x1xf32>
    %23 = vector.broadcast %22 : vector<8x1xf32> to vector<8x128xf32>
    %24 = arith.subf %20, %23 : vector<8x128xf32>
    %25 = math.exp %24 : vector<8x128xf32>
    %cst_9 = arith.constant dense<0.000000e+00> : vector<8xf32>
    %26 = vector.multi_reduction <add>, %25, %cst_9 [1] : vector<8x128xf32> to vector<8xf32>
    %27 = vector.shape_cast %26 : vector<8xf32> to vector<8x1xf32>
    %28 = math.log %27 : vector<8x1xf32>
    %29 = tpu.iota {dimensions = array<i32: 1>} : vector<8x128xi32>
    %30 = vector.broadcast %1 : vector<8x1xi32> to vector<8x128xi32>
    %31 = arith.cmpi eq, %29, %30 : vector<8x128xi32>
    %32 = arith.extui %31 : vector<8x128xi1> to vector<8x128xi32>
    %33 = arith.sitofp %32 : vector<8x128xi32> to vector<8x128xf32>
    %34 = vector.broadcast %2 : vector<1x128xf32> to vector<8x128xf32>
    %35 = arith.mulf %33, %34 : vector<8x128xf32>
    %cst_10 = arith.constant dense<0.000000e+00> : vector<8xf32>
    %36 = vector.multi_reduction <add>, %35, %cst_10 [1] : vector<8x128xf32> to vector<8xf32>
    %37 = vector.shape_cast %36 : vector<8xf32> to vector<8x1xf32>
    %38 = arith.mulf %33, %24 : vector<8x128xf32>
    %cst_11 = arith.constant dense<0.000000e+00> : vector<8xf32>
    %39 = vector.multi_reduction <add>, %38, %cst_11 [1] : vector<8x128xf32> to vector<8xf32>
    %40 = vector.shape_cast %39 : vector<8xf32> to vector<8x1xf32>
    %41 = arith.subf %28, %40 : vector<8x1xf32>
    %42 = arith.mulf %37, %41 : vector<8x1xf32>
    %43 = vector.shape_cast %42 : vector<8x1xf32> to vector<1x8x1xf32>
    %cst_12 = arith.constant dense<0.000000e+00> : vector<1xf32>
    %44 = vector.multi_reduction <add>, %43, %cst_12 [1, 2] : vector<1x8x1xf32> to vector<1xf32>
    %45 = vector.shape_cast %44 : vector<1xf32> to vector<1x1x1xf32>
    %46 = vector.extract %45[0, 0, 0] : f32 from vector<1x1x1xf32>
    %47 = vector.shape_cast %37 : vector<8x1xf32> to vector<1x8x1xf32>
    %cst_13 = arith.constant dense<0.000000e+00> : vector<1xf32>
    %48 = vector.multi_reduction <add>, %47, %cst_13 [1, 2] : vector<1x8x1xf32> to vector<1xf32>
    %49 = vector.shape_cast %48 : vector<1xf32> to vector<1x1x1xf32>
    %50 = vector.extract %49[0, 0, 0] : f32 from vector<1x1x1xf32>
    %51 = vector.broadcast %46 : f32 to vector<1x8x128xf32>
    %c0_14 = arith.constant 0 : index
    %c0_15 = arith.constant 0 : index
    %c0_16 = arith.constant 0 : index
    %52 = vector.load %arg4[%c0_14, %c0_15, %c0_16] : memref<1x8x128xf32, #tpu.memory_space<vmem>>, vector<1x8x128xf32>
    tpu.vector_store %arg4[%c0_14, %c0_15, %c0_16], %51 {strides = array<i32>} : memref<1x8x128xf32, #tpu.memory_space<vmem>>, vector<1x8x128xf32>,
    %53 = vector.broadcast %50 : f32 to vector<1x8x128xf32>
    %c0_17 = arith.constant 0 : index
    %c0_18 = arith.constant 0 : index
    %c0_19 = arith.constant 0 : index
    %54 = vector.load %arg5[%c0_17, %c0_18, %c0_19] : memref<1x8x128xf32, #tpu.memory_space<vmem>>, vector<1x8x128xf32>
    tpu.vector_store %arg5[%c0_17, %c0_18, %c0_19], %53 {strides = array<i32>} : memref<1x8x128xf32, #tpu.memory_space<vmem>>, vector<1x8x128xf32>,
    return
  }
  func.func @transform_0(%arg0: i32) -> (i32, i32) {
    %c0_i32 = arith.constant 0 : i32
    %c0_i32_0 = arith.constant 0 : i32
    return %arg0, %c0_i32 : i32, i32
  }
  func.func @transform_1(%arg0: i32) -> (i32, i32) {
    %c0_i32 = arith.constant 0 : i32
    %c0_i32_0 = arith.constant 0 : i32
    return %arg0, %c0_i32 : i32, i32
  }
  func.func @transform_2(%arg0: i32) -> (i32, i32) {
    %c0_i32 = arith.constant 0 : i32
    %c0_i32_0 = arith.constant 0 : i32
    %c0_i32_1 = arith.constant 0 : i32
    return %c0_i32, %c0_i32_0 : i32, i32
  }
  func.func @transform_3(%arg0: i32) -> (i32, i32, i32) {
    %c0_i32 = arith.constant 0 : i32
    %c0_i32_0 = arith.constant 0 : i32
    %c0_i32_1 = arith.constant 0 : i32
    return %arg0, %c0_i32, %c0_i32_0 : i32, i32, i32
  }
  func.func @transform_4(%arg0: i32) -> (i32, i32, i32) {
    %c0_i32 = arith.constant 0 : i32
    %c0_i32_0 = arith.constant 0 : i32
    %c0_i32_1 = arith.constant 0 : i32
    return %arg0, %c0_i32, %c0_i32_0 : i32, i32, i32
  }
}

</mosaic_0001>

<bundles_post_ra>
// kernel: tpu_custom_call.1
= control target key start
LH: loop header
LB: loop body
LE: loop exit
PB: predicated region body
PF: predicated region fallthrough
CT: control target
= control target key end

     0   :  { %10 = vsyncpa [#allocation3], 0  ;;  %s253_s0 = inlined_call_operand.vmem [shape: f32[8,128], index: 0, kind: input, shape index: {}]   ;;  %s254_s1 = inlined_call_operand.vmem [shape: s32[8,1], index: 1, kind: input, shape index: {}]   ;;  %s255_s2 = inlined_call_operand.vmem [shape: f32[1,128], index: 2, kind: input, shape index: {}]   ;;  %s256_s3 = inlined_call_operand.hbm [shape: f32[1,8,128], index: 3, kind: output, shape index: {0}]   ;;  %s257_s4 = inlined_call_operand.hbm [shape: f32[1,8,128], index: 4, kind: output, shape index: {1}]  }
   0x1   :  { %v18_v0 = vld [vmem:[%s253_s0] sm:$0xff] }
   0x2   :  { %11 = vsyncpa [#allocation5], 0  ;;  %21 = vmax.xlane.f32.xlu0 %v18_v0  ;;  %v209_v5 = vmov 0   ;;  %v19_v24 = vld [vmem:[%s254_s1] sm:$0xff]  ;;  %v59_v29 = vlaneseq  ;;  %v210_v33 = vmov 0.0   ;;  %vm78_vm5 = vcmask 7168  }
   0x3   :  { %144 = vset.pattern.permute.xlu1 %v209_v5  ;;  %145 = vset.pattern.permute.xlu0 %v209_v5  ;;  %v146_v31 = vld [vmem:[%s255_s2] ss:$0 sm:$0xff]  ;;  %s211_s1 = smov [#allocation2]   ;;  %s110_s22 = sshll.u32 %s256_s3, 4  ;;  %s111_s22 = int_to_ptr.hbm [resolvable:$true] %s110_s22 }
   0x4   :  { %v60_v30 = vand.u32 127, %v59_v29  ;;  %s108_s2 = sshll.u32 %s211_s1, 4  ;;  %s212_s23 = smov [#allocation4]   ;;  %s109_s2 = int_to_ptr.vmem [resolvable:$true] %s108_s2 }
   0x5   :  { %s119_s24 = sshll.u32 %s212_s23, 4  ;;  %s121_s27 = sshll.u32 %s257_s4, 4  ;;  %s120_s24 = int_to_ptr.vmem [resolvable:$true] %s119_s24  ;;  %s122_s27 = int_to_ptr.hbm [resolvable:$true] %s121_s27 }
  0x75   :  { %v22_v1 = vpop.xlane.xlu0 %21 }
  0x76   :  { %v23_v2 = vsub.f32 %v18_v0, %v22_v1 }
  0x78   :  { %v24_v3 = vmul.f32 1.442695, %v23_v2 }
  0x7a   :  { %147 = vpow2.f32 %v24_v3 }
  0x80   :  { %v148_v4 = vpop.eup %147 }
  0x81   :  { %26 = vadd.xlane.f32.xlu0 %v148_v4 }
  0xf4   :  { %v27_v6 = vpop.xlane.xlu0 %26 }
  0xf5   :  { %149 = vrcp.f32 %v27_v6  ;;  %v42_v10 = vand.u32 2147483648, %v27_v6  ;;  %v40_v12 = vand.u32 2147483647, %v27_v6  ;;  %vm36_vm1 = vweird.f32 %v27_v6 }
  0xf6   :  { %151 = vlog2.f32 %v27_v6 }
  0xf7   :  { %v43_v15 = vor.u32 1.1754944e-38, %v42_v10  ;;  %vm41_vm3 = vcmp.eq.f32.partialorder %v40_v12, 8.507059e+37 }
  0xfb   :  { %v150_v7 = vpop.eup %149 }
  0xfc   :  { %v32_v8 = vmul.f32 %v150_v7, %v27_v6  ;;  %vm37_vm0 = vweird.f32 %v150_v7  ;;  %v152_v14 = vpop.eup %151 }
  0xfd   :  { %vm38_vm2 = vmor %vm36_vm1, %vm37_vm0  ;;  %v29_v18 = vmul.f32 0.6931472, %v152_v14 }
  0xfe   :  { %v33_v9 = vsub.f32 1.0, %v32_v8 }
  0xff   :  { %v30_v21 = vsub.f32 %v23_v2, %v29_v18 }
 0x100   :  { %v34_v11 = vmul.f32 %v150_v7, %v33_v9 }
 0x102   :  { %v35_v13 = vadd.f32 %v150_v7, %v34_v11 }
 0x104   :  { %v39_v16 = vsel %vm38_vm2, %v150_v7, %v35_v13 }
 0x105   :  { %v44_v17 = vsel %vm41_vm3, %v43_v15, %v39_v16 }
 0x106   :  { %v46_v19 = vmul.f32 %v148_v4, %v44_v17 }
 0x108   :  { %v47_v20 = vsub.f32 1.0, %v46_v19 }
 0x10a   :  { %v48_v22 = vmul.f32 %v47_v20, %v47_v20 }
 0x10c   :  { %v49_v23 = vmul.f32 %v48_v22, %v30_v21 }
 0x10e   :  { %50 = vmax.xlane.f32.xlu1 %v49_v23 }
 0x127   :  { %62 = vperm.xlu1 %144, %v19_v24  }
 0x181   :  { %v51_v25 = vpop.xlane.xlu1 %50 }
 0x182   :  { %v52_v26 = vsub.f32 %v49_v23, %v51_v25 }
 0x184   :  { %v53_v27 = vmul.f32 1.442695, %v52_v26 }
 0x186   :  { %153 = vpow2.f32 %v53_v27 }
 0x18c   :  { %v154_v28 = vpop.eup %153 }
 0x18d   :  { %55 = vadd.xlane.f32.xlu2 %v154_v28 }
 0x199   :  { %v63_v32 = vpop.permute.xlu1 %62 }
 0x19a   :  { %vm64_vm4 = vcmp.eq.s32.totalorder %v60_v30, %v63_v32 }
 0x19b   :  { %v135_v34 = vsel %vm64_vm4, 1.0, %v210_v33 }
 0x19c   :  { %v73_v35 = vmul.f32 %v135_v34, %v52_v26  ;;  %v70_v36 = vmul.f32 %v146_v31, %v135_v34 }
 0x19e   :  { %74 = vadd.xlane.f32.xlu2 %v73_v35  ;;  %71 = vadd.xlane.f32.xlu0 %v70_v36 }
 0x200   :  { %v56_v37 = vpop.xlane.xlu2 %55 }
 0x201   :  { %155 = vlog2.f32 %v56_v37 }
 0x207   :  { %v156_v38 = vpop.eup %155 }
 0x208   :  { %v58_v39 = vmul.f32 0.6931472, %v156_v38 }
 0x211   :  { %v75_v40 = vpop.xlane.xlu2 %74  ;;  %v72_v41 = vpop.xlane.xlu0 %71 }
 0x212   :  { %v76_v42 = vsub.f32 %v58_v39, %v75_v40  ;;  %v89_v43 = vsel %vm78_vm5, %v72_v41, 0.0 }
 0x213   :  { %90 = vadd.xlane.f32.xlu0 %v89_v43 }
 0x214   :  { %v77_v44 = vmul.f32 %v76_v42, %v72_v41 }
 0x216   :  { %v79_v45 = vsel %vm78_vm5, %v77_v44, 0.0 }
 0x217   :  { %80 = vadd.xlane.f32.xlu2 %v79_v45 }
 0x286   :  { %v91_v46 = vpop.xlane.xlu0 %90 }
 0x287   :  { %v92_v47 = vrot.slane %v91_v46, 4 }
 0x289   :  { %v93_v48 = vadd.f32 %v92_v47, %v91_v46 }
 0x28a   :  { %v81_v49 = vpop.xlane.xlu2 %80 }
 0x28b   :  { %v94_v50 = vrot.slane %v93_v48, 2  ;;  %v82_v51 = vrot.slane %v81_v49, 4 }
 0x28d   :  { %v83_v52 = vadd.f32 %v82_v51, %v81_v49  ;;  %v95_v53 = vadd.f32 %v94_v50, %v93_v48 }
 0x28f   :  { %v84_v54 = vrot.slane %v83_v52, 2  ;;  %v96_v56 = vrot.slane %v95_v53, 1 }
 0x291   :  { %v85_v55 = vadd.f32 %v84_v54, %v83_v52  ;;  %v97_v59 = vadd.f32 %v96_v56, %v95_v53 }
 0x293   :  { %v86_v57 = vrot.slane %v85_v55, 1 }
 0x295   :  { %v87_v58 = vadd.f32 %v86_v57, %v85_v55 }
 0x297   :  { %136 = vpush %v87_v58 }
 0x298   :  { %138 = vpush %v97_v59 }
 0x2c8   :  { %s137_s28 = spop %136 }
 0x2c9   :  { %v99_v60 = vstv %s137_s28  ;;  %s139_s29 = spop %138 }
 0x2ca   :  { %100 = vst [vmem:[#allocation2] sm:$0xff] %v99_v60  ;;  %v101_v61 = vstv %s139_s29 }
 0x2cb   :  { %102 = vst [vmem:[#allocation4] sm:$0xff] %v101_v61  ;;  %113 = dma.vmem_to_hbm [thread:$0]  %s109_s2, 128, %s111_s22, [#allocation3]  }
 0x2cc   :  { %124 = dma.vmem_to_hbm [thread:$0]  %s120_s24, 128, %s122_s27, [#allocation5]  }
 0x2cd   :  { %205 = dma.done.wait [#allocation3], 128  }
 0x2ce   :  { %206 = vsyncadd [#allocation3], 4294967168 }
 0x2cf   :  { %207 = dma.done.wait [#allocation5], 128  }
 0x2d0   :  { %208 = vsyncadd [#allocation5], 4294967168 }
 0x2d1   :  { %133 = vsyncpa [#allocation3], 1 }
 0x2d2   :  { %134 = vsyncpa [#allocation5], 1 }

</bundles_post_ra>
